<compile_context>
chip_gen: v5e
topology: v5e:2x2
jax: 0.10.0
libtpu: 0.0.40
codegen_flags: <defaults>
</compile_context>

<pallas_src>
import functools

import jax
import jax.numpy as jnp
import numpy as np
from jax.experimental import pallas as pl
from jax.experimental.pallas import tpu as pltpu

# constants (values from lucidrains/alphafold2 constants.py)
NUM_AMINO_ACIDS = 21
DISTOGRAM_BUCKETS = 37
DISTOGRAM_PAD = 128          # lane-dense padded output width (consumers slice [:37] lazily)
MAX_REL_DIST = 32


# ---------------------------------------------------------------------------
# Tiling / budget helpers
# ---------------------------------------------------------------------------
def _round_up(x, m):
    return ((x + m - 1) // m) * m


def _pick_divisor_tile(n, target):
    """Largest multiple-of-8 divisor of n that is <= target (n must be mult of 8)."""
    assert n % 8 == 0
    t = min(n, (max(target, 8) // 8) * 8)
    while t >= 8:
        if n % t == 0:
            return t
        t -= 8
    return 8


def _choose_tile_and_pad(n, max_tile):
    """Pick (tile, padded_n): tile is a multiple of 8, <= max_tile, divides padded_n.

    Minimizes padding overhead first, then prefers the largest tile.  Awkward N is
    padded instead of falling back to a whole-axis block (which would blow the
    VMEM budget).
    """
    max_tile = max(8, (max_tile // 8) * 8)
    best_t, best_pad = 8, _round_up(n, 8)
    for t in range(8, max_tile + 1, 8):
        npad = _round_up(n, t)
        if npad < best_pad or (npad == best_pad and t > best_t):
            best_t, best_pad = t, npad
    return best_t, best_pad


def _vmem_budget():
    """(tile_budget_bytes, vmem_limit_bytes, chunk_rows) from physical VMEM."""
    mib = 1024 * 1024
    cap = 64 * mib
    try:
        cap = int(getattr(pltpu.get_tpu_info(), "vmem_capacity_bytes", cap))
    except Exception:  # interpret mode / older runtimes
        pass
    if cap >= 128 * mib:      # v5e / v6e: 128 MiB physical VMEM
        return 64 * mib, 96 * mib, 16
    if cap >= 64 * mib:       # v7x: 64 MiB physical, 32 MiB default scoped
        return 28 * mib, 48 * mib, 8
    return 20 * mib, 32 * mib, 8


def _max_pair_tile(d, budget, chunk):
    """Largest square tile t (mult of 8, <=256) whose fused-kernel footprint fits.

    Footprint model per grid step:
      2 * t*t*128*4        double-buffered f32 output tile
      8 * t * d            double-buffered bf16 s_i / s_j tiles
      chunk*t*(16d+2560)   in-kernel row-chunk temporaries (t, tn, pos, onehot, logits)
      ~2 MiB               weights, pos table, slack
    """
    t = 256
    while t > 8:
        use = (2 * t * t * DISTOGRAM_PAD * 4
               + 8 * t * d
               + chunk * t * (16 * d + 2560)
               + 2 * 1024 * 1024)
        if use <= budget:
            break
        t -= 8
    return max(t, 8)


# ---------------------------------------------------------------------------
# Pallas kernels
# ---------------------------------------------------------------------------
def to_pair_single_kernel(x_ref, w_ref, b_ref, s_ref):
    # x: (TM, D) f32, w: (D, D) bf16 = 0.5*(W_left + W_right),
    # b: (1, D) f32 = 0.5*(b_left + b_right)  ->  s: (TM, D) bf16
    x = x_ref[...].astype(jnp.bfloat16)
    s = jnp.dot(x, w_ref[...], preferred_element_type=jnp.float32) + b_ref[...]
    s_ref[...] = s.astype(jnp.bfloat16)


def fused_distogram_kernel(si_ref, sj_ref, pos_ref, g_ref, beta_ref, w_ref, b_ref,
                           o_ref, *, chunk, max_rel_dist):
    # Fuses: pairwise build (left_i + right_j + pos_ij), symmetrization
    # 0.5*(x + x^T), LayerNorm(dim), and the distogram Linear for one (i,j) tile.
    #   sym(x)[i,j] = s_i + s_j + pos_sym[|clip(i-j)|]   with s = 0.5*(left+right)
    # The positional term is rebuilt on the fly from the tiny symmetrized table
    # (no (N,N,D) HBM stream), and the tile is streamed in row chunks so the big
    # f32 temporaries never coexist.
    ti = si_ref.shape[1]
    tj = sj_ref.shape[1]
    d = si_ref.shape[2]
    nrel_pad = pos_ref.shape[0]

    i0 = pl.program_id(1) * ti
    j0 = pl.program_id(2) * tj

    s_j = sj_ref[0].astype(jnp.float32)                            # (TJ, D) f32
    col = j0 + jax.lax.broadcasted_iota(jnp.int32, (1, tj), 1)     # (1, TJ)
    gamma = g_ref[...]                                             # (1, D)  f32
    beta = beta_ref[...]                                           # (1, D)  f32
    pos_tbl = pos_ref[...]                                         # (nrel_pad, D) f32
    w = w_ref[...]                                                 # (D, 128) bf16
    b = b_ref[...]                                                 # (1, 128) f32

    @pl.loop(0, ti // chunk)
    def _(c):
        r0 = pl.multiple_of(c * chunk, chunk)
        s_i = si_ref[0, pl.ds(r0, chunk), :].astype(jnp.float32)   # (C, D) f32

        # relative-position indices for this row chunk -> one-hot MXU gather
        row = i0 + r0 + jax.lax.broadcasted_iota(jnp.int32, (chunk, 1), 0)
        rel = jnp.clip(row - col, -max_rel_dist, max_rel_dist) + max_rel_dist  # (C, TJ)
        onehot = (rel.reshape(chunk * tj, 1)
                  == jax.lax.broadcasted_iota(jnp.int32, (chunk * tj, nrel_pad), 1)
                  ).astype(jnp.float32)
        pos = jnp.dot(onehot, pos_tbl, preferred_element_type=jnp.float32)     # (C*TJ, D)

        # pairwise build + algebraic symmetrization (s already holds 0.5*(left+right))
        t = (s_i[:, None, :] + s_j[None, :, :]).reshape(chunk * tj, d) + pos

        # LayerNorm over D (PyTorch semantics: biased var, eps=1e-5), single pass, f32
        mu = jnp.mean(t, axis=-1, keepdims=True)
        var = jnp.mean(t * t, axis=-1, keepdims=True) - mu * mu
        tn = (t - mu) * jax.lax.rsqrt(var + 1e-5) * gamma + beta

        # distogram Linear (dim -> 128 lane-padded) on the MXU, bf16 in, f32 acc
        logits = jnp.dot(tn.astype(jnp.bfloat16), w,
                         preferred_element_type=jnp.float32) + b
        o_ref[0, pl.ds(r0, chunk), :, :] = logits.reshape(chunk, tj, DISTOGRAM_PAD)


# ---------------------------------------------------------------------------
# Forward pass
# ---------------------------------------------------------------------------
def alphafold2_forward(seq, mask, params, *, dim, max_rel_dist=MAX_REL_DIST):
    """Returns the lane-padded distogram logits (B, N, N, 128) in f32.

    Channels [:DISTOGRAM_BUCKETS] are ret.distance of the PyTorch module; the
    padding is kept so downstream consumers (loss / softmax) can slice lazily
    instead of paying a separate HBM pass here.
    """
    # `mask` only feeds the (unimplemented) attention trunk; unused here.
    del mask
    B, N = seq.shape

    tile_budget, vmem_limit, chunk_target = _vmem_budget()
    t_max = _max_pair_tile(dim, tile_budget, chunk_target)
    tile, Np = _choose_tile_and_pad(N, t_max)
    chunk = chunk_target if tile % chunk_target == 0 else 8

    # token embedding (gather -> plain JAX glue), zero-padded to a tileable length
    x_tok = params["token_emb"][seq]                       # (B, N, D)
    if Np != N:
        x_tok = jnp.pad(x_tok, ((0, 0), (0, Np - N), (0, 0)))

    # TODO(synk): msa repr m, Evoformer trunk (self.net), extra-MSA evoformer,
    # template embedder, MLM and the IPA structure module live in modules not in
    # the reference source; the trunk is treated as identity, so only the
    # distogram head consumes the pairwise representation.

    # --- to_pairwise_repr, folded for the symmetrized distogram head -----------
    # 0.5*(x + x^T)[i,j] = s_i + s_j + pos_sym[i,j] with s = 0.5*(left + right)
    #                    = x @ (0.5*(W_l + W_r)) + 0.5*(b_l + b_r)
    ws = (0.5 * (params["pair_w"][:, :dim] + params["pair_w"][:, dim:])).astype(jnp.bfloat16)
    bs = 0.5 * (params["pair_b"][None, :dim] + params["pair_b"][None, dim:])

    BN = B * Np
    x_flat = x_tok.reshape(BN, dim)
    tm = _pick_divisor_tile(BN, 512)
    s = pl.pallas_call(
        to_pair_single_kernel,
        grid=(BN // tm,),
        in_specs=[
            pl.BlockSpec((tm, dim), lambda m: (m, 0)),
            pl.BlockSpec((dim, dim), lambda m: (0, 0)),
            pl.BlockSpec((1, dim), lambda m: (0, 0)),
        ],
        out_specs=pl.BlockSpec((tm, dim), lambda m: (m, 0)),
        out_shape=jax.ShapeDtypeStruct((BN, dim), jnp.bfloat16),
        compiler_params=pltpu.CompilerParams(dimension_semantics=("parallel",)),
    )(x_flat, ws, bs)
    s = s.reshape(B, Np, dim)

    # --- tiny symmetrized relative-position table (never the (N,N,D) tensor) ---
    nrel = 2 * max_rel_dist + 1
    nrel_pad = _round_up(nrel, 128)
    tbl = params["pos_emb"]                                  # (nrel, D)
    tbl_sym = 0.5 * (tbl + tbl[::-1])                        # sym over rel -> -rel
    pos_tbl = jnp.zeros((nrel_pad, dim), jnp.float32).at[:nrel].set(tbl_sym)

    # distogram head weights padded to a lane-dense 128-wide output, bf16 weight
    dist_w_pad = (
        jnp.zeros((dim, DISTOGRAM_PAD), jnp.float32)
        .at[:, :DISTOGRAM_BUCKETS].set(params["dist_w"])
        .astype(jnp.bfloat16)
    )
    dist_b_pad = (
        jnp.zeros((1, DISTOGRAM_PAD), jnp.float32)
        .at[:, :DISTOGRAM_BUCKETS].set(params["dist_b"])
    )

    cost = pl.CostEstimate(
        flops=int(B * Np * Np * (2 * dim * DISTOGRAM_PAD + 2 * nrel_pad * dim + 12 * dim)),
        transcendentals=int(B * Np * Np),
        bytes_accessed=int(
            4 * B * Np * Np * DISTOGRAM_PAD                       # padded f32 output
            + 2 * 2 * B * Np * dim * (Np // tile + 1)             # bf16 s re-reads
            + 2 * dim * DISTOGRAM_PAD + 4 * nrel_pad * dim
        ),
    )

    kernel = functools.partial(fused_distogram_kernel, chunk=chunk,
                               max_rel_dist=max_rel_dist)

    # --- fused: pairwise build + symmetrize + LayerNorm + distogram Linear -----
    logits_pad = pl.pallas_call(
        kernel,
        grid=(B, Np // tile, Np // tile),
        in_specs=[
            pl.BlockSpec((1, tile, dim), lambda b, i, j: (b, i, 0)),   # s @ i-tile
            pl.BlockSpec((1, tile, dim), lambda b, i, j: (b, j, 0)),   # s @ j-tile
            pl.BlockSpec((nrel_pad, dim), lambda b, i, j: (0, 0)),     # sym pos table
            pl.BlockSpec((1, dim), lambda b, i, j: (0, 0)),            # LN gamma
            pl.BlockSpec((1, dim), lambda b, i, j: (0, 0)),            # LN beta
            pl.BlockSpec((dim, DISTOGRAM_PAD), lambda b, i, j: (0, 0)),
            pl.BlockSpec((1, DISTOGRAM_PAD), lambda b, i, j: (0, 0)),
        ],
        out_specs=pl.BlockSpec((1, tile, tile, DISTOGRAM_PAD),
                               lambda b, i, j: (b, i, j, 0)),
        out_shape=jax.ShapeDtypeStruct((B, Np, Np, DISTOGRAM_PAD), jnp.float32),
        compiler_params=pltpu.CompilerParams(
            dimension_semantics=("parallel", "parallel", "parallel"),
            vmem_limit_bytes=vmem_limit,
        ),
        cost_estimate=cost,
    )(s, s, pos_tbl, params["ln_g"][None, :], params["ln_b"][None, :],
      dist_w_pad, dist_b_pad)

    if Np != N:
        # spatial padding must go; the channel padding is sliced lazily downstream
        logits_pad = logits_pad[:, :N, :N, :]
    return logits_pad


# ---------------------------------------------------------------------------
# Deterministic parameter init (shapes dictated by Alphafold2.__init__)
# ---------------------------------------------------------------------------
def init_params(key, dim, num_tokens=NUM_AMINO_ACIDS, max_rel_dist=MAX_REL_DIST):
    ks = jax.random.split(key, 4)
    return {
        # nn.Embedding(num_tokens + 1, dim)
        "token_emb": jax.random.normal(ks[0], (num_tokens + 1, dim), jnp.float32) * 0.02,
        # nn.Linear(dim, dim * 2)  (stored as (in, out))
        "pair_w": jax.random.normal(ks[1], (dim, 2 * dim), jnp.float32) * 0.02,
        "pair_b": jnp.zeros((2 * dim,), jnp.float32),
        # nn.Embedding(max_rel_dist * 2 + 1, dim)
        "pos_emb": jax.random.normal(ks[2], (2 * max_rel_dist + 1, dim), jnp.float32) * 0.02,
        # nn.LayerNorm(dim)
        "ln_g": jnp.ones((dim,), jnp.float32),
        "ln_b": jnp.zeros((dim,), jnp.float32),
        # nn.Linear(dim, DISTOGRAM_BUCKETS)
        "dist_w": jax.random.normal(ks[3], (dim, DISTOGRAM_BUCKETS), jnp.float32) * 0.02,
        "dist_b": jnp.zeros((DISTOGRAM_BUCKETS,), jnp.float32),
    }


# pure-JAX f32 reference for verification
def reference_forward(seq, params, dim, max_rel_dist=MAX_REL_DIST):
    x_tok = params["token_emb"][seq]
    lr = x_tok @ params["pair_w"] + params["pair_b"]
    left, right = lr[..., :dim], lr[..., dim:]
    N = seq.shape[1]
    idx = jnp.arange(N)
    rel = jnp.clip(idx[:, None] - idx[None, :], -max_rel_dist, max_rel_dist) + max_rel_dist
    pos = params["pos_emb"][rel]
    x = left[:, :, None, :] + right[:, None, :, :] + pos[None]
    t = (x + jnp.swapaxes(x, 1, 2)) * 0.5
    mu = t.mean(-1, keepdims=True)
    var = ((t - mu) ** 2).mean(-1, keepdims=True)
    tn = (t - mu) * jax.lax.rsqrt(var + 1e-5) * params["ln_g"] + params["ln_b"]
    return tn @ params["dist_w"] + params["dist_b"]


if __name__ == "__main__":
    B, N, DIM = 2, 8, 32
    key = jax.random.PRNGKey(0)
    k_seq, k_params = jax.random.split(key)

    seq = jax.random.randint(k_seq, (B, N), 0, NUM_AMINO_ACIDS, dtype=jnp.int32)
    mask = jnp.ones((B, N), dtype=jnp.bool_)
    params = init_params(k_params, DIM)

    out_pad = alphafold2_forward(seq, mask, params, dim=DIM)
    out_pad = jax.block_until_ready(out_pad)
    assert out_pad.shape == (B, N, N, DISTOGRAM_PAD)

    # ret.distance is the first 37 channels; the lane padding is sliced lazily by
    # the consumer (here: the verification harness).
    out_pad_np = np.asarray(out_pad)
    out = out_pad_np[..., :DISTOGRAM_BUCKETS]
    ref = np.asarray(reference_forward(seq, params, DIM))
    # bf16 MXU operands / bf16 `s` storage with f32 accumulation & f32 LayerNorm.
    np.testing.assert_allclose(out, ref, atol=1e-2, rtol=1e-2)
    # padded channels carry zero weight/bias -> exactly zero
    np.testing.assert_array_equal(out_pad_np[..., DISTOGRAM_BUCKETS:], 0.0)

    print("KERNEL_OK")
</pallas_src>

<mosaic_0001>
module attributes {stable_mosaic.version = 11 : i64} {
  func.func @to_pair_single_kernel(%arg0: i32, %arg1: memref<16x32xf32, #tpu.memory_space<vmem>>, %arg2: memref<32x32xbf16, #tpu.memory_space<vmem>>, %arg3: memref<1x32xf32, #tpu.memory_space<vmem>>, %arg4: memref<16x32xbf16, #tpu.memory_space<vmem>>) attributes {dimension_semantics = [#tpu.dimension_semantics<parallel>], iteration_bounds = array<i64: 1>, scalar_prefetch = 0 : i64, scratch_operands = 0 : i64, tpu.core_type = #tpu.core_type<tc>, window_params = [{transform_indices = @transform_0, window_bounds = array<i64: 16, 32>}, {pipeline_mode = #tpu.pipeline_mode<synchronous>, transform_indices = @transform_1, window_bounds = array<i64: 32, 32>}, {pipeline_mode = #tpu.pipeline_mode<synchronous>, transform_indices = @transform_2, window_bounds = array<i64: 1, 32>}, {transform_indices = @transform_3, window_bounds = array<i64: 16, 32>}]} {
    %c0 = arith.constant 0 : index
    %c0_0 = arith.constant 0 : index
    %0 = vector.load %arg1[%c0, %c0_0] : memref<16x32xf32, #tpu.memory_space<vmem>>, vector<16x32xf32>
    %1 = arith.truncf %0 : vector<16x32xf32> to vector<16x32xbf16>
    %c0_1 = arith.constant 0 : index
    %c0_2 = arith.constant 0 : index
    %2 = vector.load %arg2[%c0_1, %c0_2] : memref<32x32xbf16, #tpu.memory_space<vmem>>, vector<32x32xbf16>
    %cst = arith.constant dense<0.000000e+00> : vector<16x32xf32>
    %3 = tpu.matmul %1, %2, %cst {dimension_numbers = #tpu.dot_dimension_numbers<[1], [0], [0], [1], [0, 0, 1, 1], [], []>} : vector<16x32xbf16>, vector<32x32xbf16>, vector<16x32xf32> -> vector<16x32xf32>
    %c0_3 = arith.constant 0 : index
    %c0_4 = arith.constant 0 : index
    %4 = vector.load %arg3[%c0_3, %c0_4] : memref<1x32xf32, #tpu.memory_space<vmem>>, vector<1x32xf32>
    %5 = vector.broadcast %4 : vector<1x32xf32> to vector<16x32xf32>
    %6 = arith.addf %3, %5 : vector<16x32xf32>
    %7 = arith.truncf %6 : vector<16x32xf32> to vector<16x32xbf16>
    %c0_5 = arith.constant 0 : index
    %c0_6 = arith.constant 0 : index
    %8 = vector.load %arg4[%c0_5, %c0_6] : memref<16x32xbf16, #tpu.memory_space<vmem>>, vector<16x32xbf16>
    tpu.vector_store %arg4[%c0_5, %c0_6], %7 {strides = array<i32>} : memref<16x32xbf16, #tpu.memory_space<vmem>>, vector<16x32xbf16>,
    return
  }
  func.func @transform_0(%arg0: i32) -> (i32, i32) {
    %c0_i32 = arith.constant 0 : i32
    %c0_i32_0 = arith.constant 0 : i32
    return %arg0, %c0_i32 : i32, i32
  }
  func.func @transform_1(%arg0: i32) -> (i32, i32) {
    %c0_i32 = arith.constant 0 : i32
    %c0_i32_0 = arith.constant 0 : i32
    %c0_i32_1 = arith.constant 0 : i32
    return %c0_i32, %c0_i32_0 : i32, i32
  }
  func.func @transform_2(%arg0: i32) -> (i32, i32) {
    %c0_i32 = arith.constant 0 : i32
    %c0_i32_0 = arith.constant 0 : i32
    %c0_i32_1 = arith.constant 0 : i32
    return %c0_i32, %c0_i32_0 : i32, i32
  }
  func.func @transform_3(%arg0: i32) -> (i32, i32) {
    %c0_i32 = arith.constant 0 : i32
    %c0_i32_0 = arith.constant 0 : i32
    return %arg0, %c0_i32 : i32, i32
  }
}

</mosaic_0001>

<bundles_post_ra>
// kernel: tpu_custom_call.1
= control target key start
LH: loop header
LB: loop body
LE: loop exit
PB: predicated region body
PF: predicated region fallthrough
CT: control target
= control target key end

     0   :  { %8 = vsyncpa [#allocation3], 0  ;;  %s256_s0 = inlined_call_operand.hbm [shape: f32[16,32], index: 0, kind: input, shape index: {}]   ;;  %s257_s1 = inlined_call_operand.hbm [shape: bf16[32,32], index: 1, kind: input, shape index: {}]   ;;  %s258_s2 = inlined_call_operand.vmem [shape: f32[1,32], index: 2, kind: input, shape index: {}]   ;;  %s259_s3 = inlined_call_operand.hbm [shape: bf16[16,32], index: 3, kind: output, shape index: {}]  }
   0x1   :  { %9 = vsyncpa [#allocation6], 0 }
   0x2   :  { %10 = vsyncpa [#allocation4], 0  ;;  %s15_s14 = sshll.u32 %s256_s0, 4  ;;  %s211_s15 = smov [#allocation2]   ;;  %s16_s14 = int_to_ptr.hbm [resolvable:$true] %s15_s14 }
   0x3   :  { %s17_s16 = sshll.u32 %s211_s15, 4  ;;  %s28_s19 = sshll.u32 %s257_s1, 4  ;;  %s18_s16 = int_to_ptr.vmem [resolvable:$true] %s17_s16  ;;  %s29_s19 = int_to_ptr.hbm [resolvable:$true] %s28_s19 }
   0x4   :  { %s212_s20 = smov 128   ;;  %s213_s21 = smov 8  }
   0x5   :  { %23 = dma.hbm_to_vmem [thread:$0]  %s16_s14, 256, %s18_s16, [#allocation3], %s212_s20, %s212_s20, %s213_s21  }
   0x6   :  { %s214_s22 = smov [#allocation5]   ;;  %s215_s24 = smov 64  }
   0x7   :  { %s30_s23 = sshll.u32 %s214_s22, 4  ;;  %s216_s25 = smov 4   ;;  %s31_s23 = int_to_ptr.vmem [resolvable:$true] %s30_s23 }
   0x8   :  { %36 = dma.hbm_to_vmem [thread:$0]  %s29_s19, 256, %s31_s23, [#allocation6], %s215_s24, %s215_s24, %s216_s25  }
   0x9   :  { %205 = dma.done.wait [#allocation3], 256  }
   0xa   :  { %206 = vsyncadd [#allocation3], 4294967040 }
   0xb   :  { %207 = dma.done.wait [#allocation6], 256  }
   0xc   :  { %208 = vsyncadd [#allocation6], 4294967040  ;;  %v124_v0 = vld [vmem:[#allocation5 + $0x8] sm:$0xff]  ;;  %v123_v1 = vld [vmem:[#allocation5] sm:$0xff]  ;;  %vm71_vm0 = vcmask 261120   ;;  %vm91_vm1 = vcmask 257024  }
   0xd   :  { %81 = vmatpush.bf16.msra.mxu0 %v124_v0  ;;  %v48_v2 = vld [vmem:[#allocation2] sm:$0xff]  ;;  %v49_v3 = vld [vmem:[#allocation2 + $0x8] sm:$0xff]  ;;  %s217_s26 = smov [#allocation7]   ;;  %s100_s30 = sshll.u32 %s259_s3, 4  ;;  %s101_s30 = int_to_ptr.hbm [resolvable:$true] %s100_s30 }
   0xe   :  { %v50_v4 = vpack.c.bf16 %v49_v3, %v48_v2  ;;  %v132_v5 = vld [vmem:[%s258_s2] ss:$0 sm:$0xff]  ;;  %s98_s27 = sshll.u32 %s217_s26, 4  ;;  %s99_s27 = int_to_ptr.vmem [resolvable:$true] %s98_s27 }
  0x11   :  { %82 = vmatpush.bf16.msra.mxu0 %v123_v1 }
  0x14   :  { %122 = vmatmul.msk.bf16.vlgmr.msra.gmra.mxu0 %vm71_vm0, %v50_v4 }
  0x91   :  { %v84_v6 = vpop.f32.mrf.mxu0 }
  0x92   :  { %v85_v7 = vadd.f32 %v132_v5, %v84_v6 }
  0x94   :  { %v89_v8 = vpack.c.bf16 %v85_v7, %v85_v7 }
  0x96   :  { %92 = vst.msk [vmem:[#allocation7] sm:$0xf] %vm91_vm1, %v89_v8 }
  0x99   :  { %v86_v9 = vpop.f32.mrf.mxu0 }
  0x9a   :  { %v87_v10 = vadd.f32 %v132_v5, %v86_v9 }
  0x9c   :  { %v90_v11 = vpack.c.bf16 %v87_v10, %v87_v10 }
  0x9e   :  { %93 = vst.msk [vmem:[#allocation7 + $0x4] sm:$0xf] %vm91_vm1, %v90_v11 }
  0x9f   :  { %106 = dma.vmem_to_hbm [thread:$0]  %s99_s27, 128, %s101_s30, [#allocation4], %s215_s24, %s215_s24, %s216_s25  }
  0xa0   :  { %209 = dma.done.wait [#allocation4], 128  }
  0xa1   :  { %210 = vsyncadd [#allocation4], 4294967168 }
  0xa2   :  { %111 = vsyncpa [#allocation3], 1 }
  0xa3   :  { %112 = vsyncpa [#allocation6], 1 }
  0xa4   :  { %113 = vsyncpa [#allocation4], 1 }

</bundles_post_ra>
